<compile_context>
chip_gen: v7x
topology: tpu7x:2x2x1
jax: 0.10.0
libtpu: 0.0.40
codegen_flags: <defaults>
</compile_context>

<pallas_src>
import math

import jax
import jax.numpy as jnp
from jax.experimental import pallas as pl
from jax.experimental.pallas import tpu as pltpu

_H_PAD = 128   # fc1 hidden (64) padded to one full lane group


def _mlp_kernel(x_ref, w1_ref, b1_ref, w2_ref, b2_ref, o_ref):
    # Both matmuls + exact (erf) GELU fused in one body.
    x = x_ref[...]                                                # (TB, D_in)
    h = jnp.dot(x, w1_ref[...], preferred_element_type=jnp.float32)
    h = h + b1_ref[...]                                           # (TB, 128)
    inv_sqrt2 = jnp.float32(1.0 / math.sqrt(2.0))
    h = 0.5 * h * (1.0 + jax.lax.erf(h * inv_sqrt2))              # gelu(0)=0 on pad lanes
    o = jnp.dot(h, w2_ref[...], preferred_element_type=jnp.float32)
    o = o + b2_ref[...]                                           # (TB, C)
    o_ref[...] = o.astype(o_ref.dtype)


def prepare_params(w1, b1, w2, b2):
    """Pre-bake weights ONCE (outside the per-step hot path):
    transpose to (in, out) layout and zero-pad the fc1 output dim (64 -> 128)
    so the GELU intermediate is lane-dense.  fc2 keeps its true output width
    (num_classes) so the kernel stores exactly the needed columns; its pad
    rows (64..127) are zero, making the hidden pad lanes inert."""
    H, D_in = w1.shape
    C = w2.shape[0]
    w1_t = jnp.zeros((D_in, _H_PAD), w1.dtype).at[:, :H].set(w1.T)
    b1_p = jnp.zeros((1, _H_PAD), b1.dtype).at[:, :H].set(b1)
    w2_t = jnp.zeros((_H_PAD, C), w2.dtype).at[:H, :].set(w2.T)
    b2_p = b2.reshape(1, C)
    return w1_t, b1_p, w2_t, b2_p


@jax.jit
def forward(x, params):
    """x: (B, D_in) f32; params from prepare_params()."""
    w1_t, b1_p, w2_t, b2_p = params
    B, D_in = x.shape
    C = w2_t.shape[1]

    # Batch tile: largest multiple of 8 <= B, capped at 1024.  1024 keeps the
    # per-step fixed pipeline overhead ~10% of the x DMA time while staying
    # within every generation's default scoped VMEM.  No host-side padding of
    # x: a ragged last tile is handled by Pallas's partial-block masking
    # (out-of-bounds rows are never stored).
    TB = min(1024, max(8, (B // 8) * 8))
    grid = (pl.cdiv(B, TB),)

    flops = 2 * B * (D_in * _H_PAD + _H_PAD * C)
    bytes_accessed = 4 * (B * D_in + D_in * _H_PAD + _H_PAD
                          + _H_PAD * C + C + B * C)

    return pl.pallas_call(
        _mlp_kernel,
        out_shape=jax.ShapeDtypeStruct((B, C), x.dtype),
        grid=grid,
        in_specs=[
            # x is batch-tiled; D_in equals the full array dim so the block is
            # legal without feature padding.
            pl.BlockSpec((TB, D_in), lambda i: (i, 0)),
            # Weights/biases: same block every iteration -> stay VMEM-resident.
            pl.BlockSpec((D_in, _H_PAD), lambda i: (0, 0)),
            pl.BlockSpec((1, _H_PAD), lambda i: (0, 0)),
            pl.BlockSpec((_H_PAD, C), lambda i: (0, 0)),
            pl.BlockSpec((1, C), lambda i: (0, 0)),
        ],
        # True-width output block: last dim == full array dim (legal), rows of
        # the (possibly partial) last tile are masked on store.
        out_specs=pl.BlockSpec((TB, C), lambda i: (i, 0)),
        compiler_params=pltpu.CompilerParams(
            dimension_semantics=("parallel",)),
        cost_estimate=pl.CostEstimate(
            flops=flops,
            transcendentals=B * _H_PAD,
            bytes_accessed=bytes_accessed),
    )(x, w1_t, b1_p, w2_t, b2_p)


def fully_connected_nn(x, w1, b1, w2, b2):
    """One-shot convenience wrapper.  NOTE: re-runs prepare_params() every
    call -- in a training/serving loop call prepare_params() once and reuse."""
    params = prepare_params(w1, b1, w2, b2)
    return forward(x, params)


def _reference(x, w1, b1, w2, b2):
    h = x @ w1.T + b1
    h = 0.5 * h * (1.0 + jax.lax.erf(h / jnp.sqrt(2.0)))
    return h @ w2.T + b2


if __name__ == "__main__":
    input_size = 28 * 28
    num_of_classes = 10

    key = jax.random.PRNGKey(0)
    kx, kw1, kb1, kw2, kb2 = jax.random.split(key, 5)

    # Deterministic PyTorch-style (uniform) init for the Linear layers.
    bound1 = 1.0 / math.sqrt(input_size)
    w1 = jax.random.uniform(kw1, (64, input_size), jnp.float32, -bound1, bound1)
    b1 = jax.random.uniform(kb1, (64,), jnp.float32, -bound1, bound1)
    bound2 = 1.0 / math.sqrt(64)
    w2 = jax.random.uniform(kw2, (num_of_classes, 64), jnp.float32, -bound2, bound2)
    b2 = jax.random.uniform(kb2, (num_of_classes,), jnp.float32, -bound2, bound2)

    # Pre-bake padded/transposed weights once (hot path never re-transposes).
    params = prepare_params(w1, b1, w2, b2)

    # batch=8 is the clean tiled path; batch=12 exercises the ragged last tile
    # (partial-block masking, no host-side jnp.pad).
    for batch in (8, 12):
        x = jax.random.normal(kx, (batch, input_size), dtype=jnp.float32)
        out = jax.block_until_ready(forward(x, params))
        ref = _reference(x, w1, b1, w2, b2)
        assert out.shape == (batch, num_of_classes)
        assert jnp.allclose(out, ref, atol=1e-5, rtol=1e-5)

    print("KERNEL_OK")
</pallas_src>

<mosaic_0001>
module attributes {stable_mosaic.version = 11 : i64} {
  func.func @_mlp_kernel(%arg0: i32, %arg1: memref<8x784xf32, #tpu.memory_space<vmem>>, %arg2: memref<784x128xf32, #tpu.memory_space<vmem>>, %arg3: memref<1x128xf32, #tpu.memory_space<vmem>>, %arg4: memref<128x10xf32, #tpu.memory_space<vmem>>, %arg5: memref<1x10xf32, #tpu.memory_space<vmem>>, %arg6: memref<8x10xf32, #tpu.memory_space<vmem>>) attributes {dimension_semantics = [#tpu.dimension_semantics<parallel>], iteration_bounds = array<i64: 1>, scalar_prefetch = 0 : i64, scratch_operands = 0 : i64, tpu.core_type = #tpu.core_type<tc>, window_params = [{transform_indices = @transform_0, window_bounds = array<i64: 8, 784>}, {pipeline_mode = #tpu.pipeline_mode<synchronous>, transform_indices = @transform_1, window_bounds = array<i64: 784, 128>}, {pipeline_mode = #tpu.pipeline_mode<synchronous>, transform_indices = @transform_2, window_bounds = array<i64: 1, 128>}, {pipeline_mode = #tpu.pipeline_mode<synchronous>, transform_indices = @transform_3, window_bounds = array<i64: 128, 10>}, {pipeline_mode = #tpu.pipeline_mode<synchronous>, transform_indices = @transform_4, window_bounds = array<i64: 1, 10>}, {transform_indices = @transform_5, window_bounds = array<i64: 8, 10>}]} {
    %c0 = arith.constant 0 : index
    %c0_0 = arith.constant 0 : index
    %0 = vector.load %arg1[%c0, %c0_0] : memref<8x784xf32, #tpu.memory_space<vmem>>, vector<8x784xf32>
    %c0_1 = arith.constant 0 : index
    %c0_2 = arith.constant 0 : index
    %1 = vector.load %arg2[%c0_1, %c0_2] : memref<784x128xf32, #tpu.memory_space<vmem>>, vector<784x128xf32>
    %cst = arith.constant dense<0.000000e+00> : vector<8x128xf32>
    %2 = tpu.matmul %0, %1, %cst {dimension_numbers = #tpu.dot_dimension_numbers<[1], [0], [0], [1], [0, 0, 1, 1], [], []>} : vector<8x784xf32>, vector<784x128xf32>, vector<8x128xf32> -> vector<8x128xf32>
    %c0_3 = arith.constant 0 : index
    %c0_4 = arith.constant 0 : index
    %3 = vector.load %arg3[%c0_3, %c0_4] : memref<1x128xf32, #tpu.memory_space<vmem>>, vector<1x128xf32>
    %4 = vector.broadcast %3 : vector<1x128xf32> to vector<8x128xf32>
    %5 = arith.addf %2, %4 : vector<8x128xf32>
    %cst_5 = arith.constant 5.000000e-01 : f32
    %6 = vector.broadcast %cst_5 : f32 to vector<8x128xf32>
    %7 = arith.mulf %6, %5 : vector<8x128xf32>
    %cst_6 = arith.constant 0.707106769 : f32
    %8 = vector.broadcast %cst_6 : f32 to vector<8x128xf32>
    %9 = arith.mulf %5, %8 : vector<8x128xf32>
    %10 = math.erf %9 : vector<8x128xf32>
    %cst_7 = arith.constant 1.000000e+00 : f32
    %11 = vector.broadcast %cst_7 : f32 to vector<8x128xf32>
    %12 = arith.addf %11, %10 : vector<8x128xf32>
    %13 = arith.mulf %7, %12 : vector<8x128xf32>
    %c0_8 = arith.constant 0 : index
    %c0_9 = arith.constant 0 : index
    %14 = vector.load %arg4[%c0_8, %c0_9] : memref<128x10xf32, #tpu.memory_space<vmem>>, vector<128x10xf32>
    %cst_10 = arith.constant dense<0.000000e+00> : vector<8x10xf32>
    %15 = tpu.matmul %13, %14, %cst_10 {dimension_numbers = #tpu.dot_dimension_numbers<[1], [0], [0], [1], [0, 0, 1, 1], [], []>} : vector<8x128xf32>, vector<128x10xf32>, vector<8x10xf32> -> vector<8x10xf32>
    %c0_11 = arith.constant 0 : index
    %c0_12 = arith.constant 0 : index
    %16 = vector.load %arg5[%c0_11, %c0_12] : memref<1x10xf32, #tpu.memory_space<vmem>>, vector<1x10xf32>
    %17 = vector.broadcast %16 : vector<1x10xf32> to vector<8x10xf32>
    %18 = arith.addf %15, %17 : vector<8x10xf32>
    %c0_13 = arith.constant 0 : index
    %c0_14 = arith.constant 0 : index
    %19 = vector.load %arg6[%c0_13, %c0_14] : memref<8x10xf32, #tpu.memory_space<vmem>>, vector<8x10xf32>
    tpu.vector_store %arg6[%c0_13, %c0_14], %18 {strides = array<i32>} : memref<8x10xf32, #tpu.memory_space<vmem>>, vector<8x10xf32>,
    return
  }
  func.func @transform_0(%arg0: i32) -> (i32, i32) {
    %c0_i32 = arith.constant 0 : i32
    %c0_i32_0 = arith.constant 0 : i32
    return %arg0, %c0_i32 : i32, i32
  }
  func.func @transform_1(%arg0: i32) -> (i32, i32) {
    %c0_i32 = arith.constant 0 : i32
    %c0_i32_0 = arith.constant 0 : i32
    %c0_i32_1 = arith.constant 0 : i32
    return %c0_i32, %c0_i32_0 : i32, i32
  }
  func.func @transform_2(%arg0: i32) -> (i32, i32) {
    %c0_i32 = arith.constant 0 : i32
    %c0_i32_0 = arith.constant 0 : i32
    %c0_i32_1 = arith.constant 0 : i32
    return %c0_i32, %c0_i32_0 : i32, i32
  }
  func.func @transform_3(%arg0: i32) -> (i32, i32) {
    %c0_i32 = arith.constant 0 : i32
    %c0_i32_0 = arith.constant 0 : i32
    %c0_i32_1 = arith.constant 0 : i32
    return %c0_i32, %c0_i32_0 : i32, i32
  }
  func.func @transform_4(%arg0: i32) -> (i32, i32) {
    %c0_i32 = arith.constant 0 : i32
    %c0_i32_0 = arith.constant 0 : i32
    %c0_i32_1 = arith.constant 0 : i32
    return %c0_i32, %c0_i32_0 : i32, i32
  }
  func.func @transform_5(%arg0: i32) -> (i32, i32) {
    %c0_i32 = arith.constant 0 : i32
    %c0_i32_0 = arith.constant 0 : i32
    return %arg0, %c0_i32 : i32, i32
  }
}

</mosaic_0001>

<bundles_post_ra>
// kernel: forward.1
= control target key start
LH: loop header
LB: loop body
LE: loop exit
PB: predicated region body
PF: predicated region fallthrough
CT: control target
= control target key end

     0   :  { %10 = vsyncpa [#allocation3], 0  ;;  %s1041_s0 = inlined_call_operand.vmem [shape: f32[8,784], index: 0, kind: input, shape index: {}]   ;;  %s1042_s1 = inlined_call_operand.hbm [shape: f32[784,128], index: 1, kind: input, shape index: {}]   ;;  %s1043_s2 = inlined_call_operand.vmem [shape: f32[1,128], index: 2, kind: input, shape index: {}]   ;;  %s1044_s3 = inlined_call_operand.vmem [shape: f32[128,10], index: 3, kind: input, shape index: {}]   ;;  %s1045_s4 = inlined_call_operand.vmem [shape: f32[1,10], index: 4, kind: input, shape index: {}]   ;;  %s1046_s5 = inlined_call_operand.hbm [shape: f32[8,10], index: 5, kind: output, shape index: {}]  }
   0x1   :  { %11 = vsyncpa [#allocation4], 0  ;;  %s896_s18 = smov [#allocation2]   ;;  %s848_s22 = scalar_lea.hbm %s1042_s1, 12544 }
   0x2   :  { %s19_s19 = sshll.u32 %s896_s18, 4  ;;  %p849_p0 = scmp.ne.s32.totalorder %s1042_s1, %s848_s22  ;;  %s20_s19 = int_to_ptr.vmem [resolvable:$true] %s19_s19 }
   0x3   :  { %p852_p1 = scmp.lt.u32.totalorder %s848_s22, %s1042_s1 }
   0x5   :  { %p854_p2 = pnand %p852_p1, %p849_p0 }
   0x7   :  { %857 = shalt.err (!%p854_p2)
}
   0x8   :  { %s858_s27 = scalar_lea.vmem %s20_s19, 12544  ;;  %p863_p4 = scmp.lt.s32.totalorder %s20_s19, %s20_s19 }
   0x9   :  { %p859_p3 = scmp.ne.s32.totalorder %s20_s19, %s858_s27  ;;  %p864_p5 = scmp.lt.s32.totalorder %s858_s27, %s858_s27 }
   0xb   :  { %p865_p6 = por %p864_p5, %p863_p4 }
   0xd   :  { %p866_p7 = pnand %p865_p6, %p859_p3 }
   0xf   :  { %869 = shalt.err (!%p866_p7)
}
  0x10   :  { %s897_s28 = smov 128   ;;  %s898_s29 = smov 8  }
  0x11   :  { %25 = dma.hbm_to_vmem [thread:$0]  %s1042_s1, 12544, %s20_s19, [#allocation3], %s897_s28, %s897_s28, %s898_s29  }
  0x12   :  { %892 = dma.done.wait [#allocation3], 12544  }
  0x13   :  { %893 = vsyncadd [#allocation3], 4294954752  ;;  %v58_v0 = vld [vmem:[#allocation2 + $0x80] sm:$0xff]  ;;  %v59_v1 = vld [vmem:[#allocation2 + $0x88] sm:$0xff]  ;;  %vm900_vm0 = vmmov 0   ;;  %vm147_vm1 = vcmask 130048  }
  0x14   :  { %v42_v2 = vld [vmem:[#allocation2] sm:$0xff]  ;;  %v716_v3 = vpack.c.bf16 %v59_v1, %v58_v0  ;;  %v43_v4 = vld [vmem:[#allocation2 + $0x8] sm:$0xff]  ;;  %v60_v11 = vld [vmem:[#allocation2 + $0x90] sm:$0xff]  ;;  %s902_s27 = smov [#allocation5]   ;;  %vm529_vm2 = vcmask 80896  }
  0x15   :  { %v90_v5 = vld [vmem:[#allocation2 + $0x180] sm:$0xff]  ;;  %v91_v6 = vld [vmem:[#allocation2 + $0x188] sm:$0xff]  ;;  %v718_v7 = vpack.c.bf16 %v43_v4, %v42_v2  ;;  %v61_v13 = vld [vmem:[#allocation2 + $0x98] sm:$0xff] }
  0x16   :  { %v748_v8 = vpack.c.bf16 %v91_v6, %v90_v5  ;;  %v74_v9 = vld [vmem:[#allocation2 + $0x100] sm:$0xff]  ;;  %v75_v10 = vld [vmem:[#allocation2 + $0x108] sm:$0xff]  ;;  %717 = vmatprep.subr.bf16.mxu0 %v716_v3  ;;  %v44_v14 = vld [vmem:[#allocation2 + $0x10] sm:$0xff]  ;;  %v720_v16 = vpack.c.bf16 %v61_v13, %v60_v11 }
  0x17   :  { %v750_v12 = vpack.c.bf16 %v75_v10, %v74_v9  ;;  %v45_v15 = vld [vmem:[#allocation2 + $0x18] sm:$0xff]  ;;  %719 = vmatpush3.bf16.msra.mxu0 %v718_v7  ;;  %v92_v18 = vld [vmem:[#allocation2 + $0x190] sm:$0xff]  ;;  %v62_v23 = vld [vmem:[#allocation2 + $0xa0] sm:$0xff] }
  0x18   :  { %749 = vmatprep.subr.bf16.mxu1 %v748_v8  ;;  %v722_v17 = vpack.c.bf16 %v45_v15, %v44_v14  ;;  %v93_v19 = vld [vmem:[#allocation2 + $0x198] sm:$0xff]  ;;  %v76_v20 = vld [vmem:[#allocation2 + $0x110] sm:$0xff]  ;;  %v63_v24 = vld [vmem:[#allocation2 + $0xa8] sm:$0xff]  ;;  %721 = vmatprep.subr.bf16.mxu0 %v720_v16 }
  0x19   :  { %751 = vmatpush3.bf16.msra.mxu1 %v750_v12  ;;  %v752_v21 = vpack.c.bf16 %v93_v19, %v92_v18  ;;  %v77_v22 = vld [vmem:[#allocation2 + $0x118] sm:$0xff]  ;;  %v724_v26 = vpack.c.bf16 %v63_v24, %v62_v23  ;;  %v46_v27 = vld [vmem:[#allocation2 + $0x20] sm:$0xff]  ;;  %v47_v28 = vld [vmem:[#allocation2 + $0x28] sm:$0xff] }
  0x1a   :  { %v754_v25 = vpack.c.bf16 %v77_v22, %v76_v20  ;;  %v94_v29 = vld [vmem:[#allocation2 + $0x1a0] sm:$0xff]  ;;  %v95_v30 = vld [vmem:[#allocation2 + $0x1a8] sm:$0xff]  ;;  %v726_v33 = vpack.c.bf16 %v47_v28, %v46_v27  ;;  %v64_v35 = vld [vmem:[#allocation2 + $0xb0] sm:$0xff] }
  0x1b   :  { %753 = vmatprep.subr.bf16.mxu1 %v752_v21  ;;  %v78_v31 = vld [vmem:[#allocation2 + $0x120] sm:$0xff]  ;;  %v79_v32 = vld [vmem:[#allocation2 + $0x128] sm:$0xff]  ;;  %723 = vmatpush3.bf16.msra.mxu0 %v722_v17  ;;  %v756_v34 = vpack.c.bf16 %v95_v30, %v94_v29  ;;  %v65_v36 = vld [vmem:[#allocation2 + $0xb8] sm:$0xff] }
  0x1c   :  { %v48_v37 = vld [vmem:[#allocation2 + $0x30] sm:$0xff]  ;;  %725 = vmatprep.subr.bf16.mxu0 %v724_v26  ;;  %v758_v38 = vpack.c.bf16 %v79_v32, %v78_v31  ;;  %v728_v39 = vpack.c.bf16 %v65_v36, %v64_v35  ;;  %v49_v40 = vld [vmem:[#allocation2 + $0x38] sm:$0xff]  ;;  %v66_v46 = vld [vmem:[#allocation2 + $0xc0] sm:$0xff] }
  0x1d   :  { %755 = vmatpush3.bf16.msra.mxu1 %v754_v25  ;;  %v96_v41 = vld [vmem:[#allocation2 + $0x1b0] sm:$0xff]  ;;  %v97_v42 = vld [vmem:[#allocation2 + $0x1b8] sm:$0xff]  ;;  %v67_v47 = vld [vmem:[#allocation2 + $0xc8] sm:$0xff]  ;;  %v730_v48 = vpack.c.bf16 %v49_v40, %v48_v37 }
  0x1e   :  { %757 = vmatprep.subr.bf16.mxu1 %v756_v34  ;;  %v760_v43 = vpack.c.bf16 %v97_v42, %v96_v41  ;;  %v80_v44 = vld [vmem:[#allocation2 + $0x130] sm:$0xff]  ;;  %v81_v45 = vld [vmem:[#allocation2 + $0x138] sm:$0xff]  ;;  %v98_v49 = vld [vmem:[#allocation2 + $0x1c0] sm:$0xff]  ;;  %v732_v52 = vpack.c.bf16 %v67_v47, %v66_v46 }
  0x1f   :  { %727 = vmatpush3.bf16.msra.mxu0 %v726_v33  ;;  %v99_v50 = vld [vmem:[#allocation2 + $0x1c8] sm:$0xff]  ;;  %v762_v51 = vpack.c.bf16 %v81_v45, %v80_v44  ;;  %v50_v53 = vld [vmem:[#allocation2 + $0x40] sm:$0xff]  ;;  %v68_v58 = vld [vmem:[#allocation2 + $0xd0] sm:$0xff] }
  0x20   :  { %729 = vmatprep.subr.bf16.mxu0 %v728_v39  ;;  %v51_v54 = vld [vmem:[#allocation2 + $0x48] sm:$0xff]  ;;  %v82_v55 = vld [vmem:[#allocation2 + $0x140] sm:$0xff]  ;;  %v764_v56 = vpack.c.bf16 %v99_v50, %v98_v49  ;;  %v69_v59 = vld [vmem:[#allocation2 + $0xd8] sm:$0xff]  ;;  %v899_v50 = vmov 0.0|0.0  }
  0x21   :  { %759 = vmatpush3.bf16.msra.mxu1 %v758_v38  ;;  %v83_v57 = vld [vmem:[#allocation2 + $0x148] sm:$0xff]  ;;  %v100_v60 = vld [vmem:[#allocation2 + $0x1d0] sm:$0xff]  ;;  %v101_v61 = vld [vmem:[#allocation2 + $0x1d8] sm:$0xff]  ;;  %v734_v62 = vpack.c.bf16 %v51_v54, %v50_v53  ;;  %v736_v0 = vpack.c.bf16 %v69_v59, %v68_v58 }
  0x22   :  { %761 = vmatprep.subr.bf16.mxu1 %v760_v43  ;;  %v766_v63 = vpack.c.bf16 %v83_v57, %v82_v55  ;;  %v52_v1 = vld [vmem:[#allocation2 + $0x50] sm:$0xff]  ;;  %v53_v2 = vld [vmem:[#allocation2 + $0x58] sm:$0xff]  ;;  %v768_v4 = vpack.c.bf16 %v101_v61, %v100_v60  ;;  %v70_v6 = vld [vmem:[#allocation2 + $0xe0] sm:$0xff]  ;;  %v901_v60 = vmov 0.0  }
  0x23   :  { %731 = vmatpush3.bf16.msra.mxu0 %v730_v48  ;;  %v84_v3 = vld [vmem:[#allocation2 + $0x150] sm:$0xff]  ;;  %v85_v5 = vld [vmem:[#allocation2 + $0x158] sm:$0xff]  ;;  %v71_v7 = vld [vmem:[#allocation2 + $0xe8] sm:$0xff]  ;;  %v738_v10 = vpack.c.bf16 %v53_v2, %v52_v1 }
  0x24   :  { %733 = vmatprep.subr.bf16.mxu0 %v732_v52  ;;  %v102_v8 = vld [vmem:[#allocation2 + $0x1e0] sm:$0xff]  ;;  %v103_v9 = vld [vmem:[#allocation2 + $0x1e8] sm:$0xff]  ;;  %v770_v13 = vpack.c.bf16 %v85_v5, %v84_v3  ;;  %v740_v14 = vpack.c.bf16 %v71_v7, %v70_v6  ;;  %v72_v19 = vld [vmem:[#allocation2 + $0xf0] sm:$0xff] }
  0x25   :  { %763 = vmatpush3.bf16.msra.mxu1 %v762_v51  ;;  %v54_v11 = vld [vmem:[#allocation2 + $0x60] sm:$0xff]  ;;  %v36_v12 = vld [vmem:[%s1041_s0 + $0x8] sm:$0xff]  ;;  %v772_v18 = vpack.c.bf16 %v103_v9, %v102_v8  ;;  %v73_v20 = vld [vmem:[#allocation2 + $0xf8] sm:$0xff] }
  0x26   :  { %765 = vmatprep.subr.bf16.mxu1 %v764_v56  ;;  %v55_v15 = vld [vmem:[#allocation2 + $0x68] sm:$0xff]  ;;  %v86_v16 = vld [vmem:[#allocation2 + $0x160] sm:$0xff]  ;;  %215 = vmatprep.mubr.f32.mxu0 %v36_v12  ;;  %v38_v21 = vld [vmem:[%s1041_s0 + $0x18] sm:$0xff]  ;;  %v744_v26 = vpack.c.bf16 %v73_v20, %v72_v19 }
  0x27   :  { %735 = vmatpush3.bf16.msra.mxu0 %v734_v62  ;;  %v87_v17 = vld [vmem:[#allocation2 + $0x168] sm:$0xff]  ;;  %v104_v22 = vld [vmem:[#allocation2 + $0x1f0] sm:$0xff]  ;;  %v105_v23 = vld [vmem:[#allocation2 + $0x1f8] sm:$0xff]  ;;  %285 = vmatprep.mubr.f32.mxu1 %v38_v21  ;;  %v742_v24 = vpack.c.bf16 %v55_v15, %v54_v11 }
  0x28   :  { %737 = vmatprep.subr.bf16.mxu0 %v736_v0  ;;  %v774_v25 = vpack.c.bf16 %v87_v17, %v86_v16  ;;  %v56_v27 = vld [vmem:[#allocation2 + $0x70] sm:$0xff]  ;;  %v57_v28 = vld [vmem:[#allocation2 + $0x78] sm:$0xff]  ;;  %v776_v30 = vpack.c.bf16 %v105_v23, %v104_v22  ;;  %v122_v32 = vld [vmem:[#allocation2 + $0x280] sm:$0xff] }
  0x29   :  { %767 = vmatpush3.bf16.msra.mxu1 %v766_v63  ;;  %v88_v29 = vld [vmem:[#allocation2 + $0x170] sm:$0xff]  ;;  %v89_v31 = vld [vmem:[#allocation2 + $0x178] sm:$0xff]  ;;  %v123_v33 = vld [vmem:[#allocation2 + $0x288] sm:$0xff]  ;;  %v746_v34 = vpack.c.bf16 %v57_v28, %v56_v27 }
  0x2a   :  { %769 = vmatprep.subr.bf16.mxu1 %v768_v4  ;;  %v778_v35 = vpack.c.bf16 %v89_v31, %v88_v29  ;;  %v780_v36 = vpack.c.bf16 %v123_v33, %v122_v32  ;;  %v106_v37 = vld [vmem:[#allocation2 + $0x200] sm:$0xff]  ;;  %v107_v38 = vld [vmem:[#allocation2 + $0x208] sm:$0xff]  ;;  %v124_v39 = vld [vmem:[#allocation2 + $0x290] sm:$0xff] }
  0x2b   :  { %739 = vmatpush3.bf16.msra.mxu0 %v738_v10  ;;  %v125_v40 = vld [vmem:[#allocation2 + $0x298] sm:$0xff]  ;;  %v35_v41 = vld [vmem:[%s1041_s0] sm:$0xff]  ;;  %v782_v42 = vpack.c.bf16 %v107_v38, %v106_v37  ;;  %v37_v43 = vld [vmem:[%s1041_s0 + $0x10] sm:$0xff] }
  0x2c   :  { %741 = vmatprep.subr.bf16.mxu0 %v740_v14  ;;  %v108_v44 = vld [vmem:[#allocation2 + $0x210] sm:$0xff]  ;;  %v784_v45 = vpack.c.bf16 %v125_v40, %v124_v39  ;;  %v109_v46 = vld [vmem:[#allocation2 + $0x218] sm:$0xff]  ;;  %v126_v47 = vld [vmem:[#allocation2 + $0x2a0] sm:$0xff] }
  0x2d   :  { %771 = vmatpush3.bf16.msra.mxu1 %v770_v13  ;;  %v127_v48 = vld [vmem:[#allocation2 + $0x2a8] sm:$0xff]  ;;  %v138_v51 = vld [vmem:[#allocation2 + $0x300] sm:$0xff]  ;;  %v786_v54 = vpack.c.bf16 %v109_v46, %v108_v44  ;;  %v128_v58 = vld [vmem:[#allocation2 + $0x2b0] sm:$0xff] }
  0x2e   :  { %773 = vmatprep.subr.bf16.mxu1 %v772_v18  ;;  %v40_v49 = vld [vmem:[%s1041_s0 + $0x28] sm:$0xff]  ;;  %v788_v55 = vpack.c.bf16 %v127_v48, %v126_v47  ;;  %v110_v56 = vld [vmem:[#allocation2 + $0x220] sm:$0xff]  ;;  %v129_v59 = vld [vmem:[#allocation2 + $0x2b8] sm:$0xff] }
  0x2f   :  { %743 = vmatpush3.bf16.msra.mxu0 %v742_v24  ;;  %v139_v52 = vld [vmem:[#allocation2 + $0x308] sm:$0xff]  ;;  %v41_v61 = vld [vmem:[%s1041_s0 + $0x30] sm:$0xff]  ;;  %v792_v63 = vpack.c.bf16 %v129_v59, %v128_v58  ;;  %v113_v1 = vld [vmem:[#allocation2 + $0x238] sm:$0xff] }
  0x30   :  { %745 = vmatprep.subr.bf16.mxu0 %v744_v26  ;;  %v813_v53 = vpack.c.bf16 %v139_v52, %v138_v51  ;;  %v111_v57 = vld [vmem:[#allocation2 + $0x228] sm:$0xff]  ;;  %v112_v0 = vld [vmem:[#allocation2 + $0x230] sm:$0xff]  ;;  %v130_v2 = vld [vmem:[#allocation2 + $0x2c0] sm:$0xff] }
  0x31   :  { %775 = vmatpush3.bf16.msra.mxu1 %v774_v25  ;;  %v790_v62 = vpack.c.bf16 %v111_v57, %v110_v56  ;;  %v131_v3 = vld [vmem:[#allocation2 + $0x2c8] sm:$0xff]  ;;  %v794_v4 = vpack.c.bf16 %v113_v1, %v112_v0  ;;  %v114_v6 = vld [vmem:[#allocation2 + $0x240] sm:$0xff]  ;;  %v132_v8 = vld [vmem:[#allocation2 + $0x2d0] sm:$0xff] }
  0x32   :  { %777 = vmatprep.subr.bf16.mxu1 %v776_v30  ;;  %v796_v5 = vpack.c.bf16 %v131_v3, %v130_v2  ;;  %v115_v7 = vld [vmem:[#allocation2 + $0x248] sm:$0xff]  ;;  %v133_v9 = vld [vmem:[#allocation2 + $0x2d8] sm:$0xff]  ;;  %v116_v12 = vld [vmem:[#allocation2 + $0x250] sm:$0xff] }
  0x33   :  { %747 = vmatpush3.bf16.msra.mxu0 %v746_v34  ;;  %v798_v10 = vpack.c.bf16 %v115_v7, %v114_v6  ;;  %v800_v11 = vpack.c.bf16 %v133_v9, %v132_v8  ;;  %v117_v13 = vld [vmem:[#allocation2 + $0x258] sm:$0xff]  ;;  %v134_v14 = vld [vmem:[#allocation2 + $0x2e0] sm:$0xff]  ;;  %v135_v15 = vld [vmem:[#allocation2 + $0x2e8] sm:$0xff] }
  0x34   :  { %781 = vmatprep.subr.bf16.mxu0 %v780_v36  ;;  %v802_v16 = vpack.c.bf16 %v117_v13, %v116_v12  ;;  %v804_v17 = vpack.c.bf16 %v135_v15, %v134_v14  ;;  %v118_v18 = vld [vmem:[#allocation2 + $0x260] sm:$0xff]  ;;  %v119_v19 = vld [vmem:[#allocation2 + $0x268] sm:$0xff]  ;;  %v136_v20 = vld [vmem:[#allocation2 + $0x2f0] sm:$0xff] }
  0x35   :  { %779 = vmatpush3.bf16.msra.mxu1 %v778_v35  ;;  %v137_v21 = vld [vmem:[#allocation2 + $0x2f8] sm:$0xff]  ;;  %v806_v22 = vpack.c.bf16 %v119_v19, %v118_v18  ;;  %v120_v24 = vld [vmem:[#allocation2 + $0x270] sm:$0xff]  ;;  %v39_v27 = vld [vmem:[%s1041_s0 + $0x20] sm:$0xff]  ;;  %s537_s0 = sshll.u32 %s902_s27, 4  ;;  %s538_s0 = int_to_ptr.vmem [resolvable:$true] %s537_s0 }
  0x36   :  { %812 = vmatprep.subr.bf16.mxu1 %v899_v50  ;;  %216 = vmatmul.mubr.f32.vlgmr.msra.gmra.mrb[0].mxu0 %v35_v41  ;;  %v808_v23 = vpack.c.bf16 %v137_v21, %v136_v20  ;;  %v121_v25 = vld [vmem:[#allocation2 + $0x278] sm:$0xff]  ;;  %v436_v28 = vld [vmem:[%s1044_s3] sm:$0xff]  ;;  %v437_v29 = vld [vmem:[%s1044_s3 + $0x8] sm:$0xff]  ;;  %s870_s28 = scalar_lea.vmem %s538_s0, 128  ;;  %p875_p9 = scmp.lt.s32.totalorder %s538_s0, %s538_s0 }
  0x37   :  { %783 = vmatpush3.bf16.msra.mxu0 %v782_v42  ;;  %355 = vmatprep.mubr.f32.mxu0 %v40_v49  ;;  %v810_v26 = vpack.c.bf16 %v121_v25, %v120_v24  ;;  %v438_v30 = vld [vmem:[%s1044_s3 + $0x10] sm:$0xff]  ;;  %v816_v31 = vpack.c.bf16 %v437_v29, %v436_v28  ;;  %v439_v32 = vld [vmem:[%s1044_s3 + $0x18] sm:$0xff]  ;;  %v440_v34 = vld [vmem:[%s1044_s3 + $0x20] sm:$0xff]  ;;  %p871_p8 = scmp.ne.s32.totalorder %s538_s0, %s870_s28  ;;  %p876_p10 = scmp.lt.s32.totalorder %s870_s28, %s870_s28 }
  0x38   :  { %286 = vmatmul.mubr.f32.vlgmr.msra.gmra.mrb[0].mxu1 %v37_v43  ;;  %785 = vmatprep.subr.bf16.mxu0 %v784_v45  ;;  %v819_v33 = vpack.c.bf16 %v439_v32, %v438_v30  ;;  %v441_v35 = vld [vmem:[%s1044_s3 + $0x28] sm:$0xff]  ;;  %v442_v37 = vld [vmem:[%s1044_s3 + $0x30] sm:$0xff]  ;;  %v443_v38 = vld [vmem:[%s1044_s3 + $0x38] sm:$0xff] }
  0x39   :  { %814 = vmatpush3.bf16.msra.mxu1 %v813_v53  ;;  %678 = vmatprep.mubr.msk.f32.mxu1 %vm900_vm0, %v901_v60  ;;  %v822_v36 = vpack.c.bf16 %v441_v35, %v440_v34  ;;  %v825_v39 = vpack.c.bf16 %v443_v38, %v442_v37  ;;  %v444_v40 = vld [vmem:[%s1044_s3 + $0x40] sm:$0xff]  ;;  %v445_v41 = vld [vmem:[%s1044_s3 + $0x48] sm:$0xff]  ;;  %v446_v43 = vld [vmem:[%s1044_s3 + $0x50] sm:$0xff]  ;;  %p877_p11 = por %p876_p10, %p875_p9 }
  0x3a   :  { %815 = vmatprep.subr.bf16.mxu1 %v899_v50  ;;  %v828_v42 = vpack.c.bf16 %v445_v41, %v444_v40  ;;  %v447_v44 = vld [vmem:[%s1044_s3 + $0x58] sm:$0xff]  ;;  %v448_v46 = vld [vmem:[%s1044_s3 + $0x60] sm:$0xff]  ;;  %v449_v47 = vld [vmem:[%s1044_s3 + $0x68] sm:$0xff] }
  0x3b   :  { %787 = vmatpush3.bf16.msra.mxu0 %v786_v54  ;;  %v831_v45 = vpack.c.bf16 %v447_v44, %v446_v43  ;;  %v834_v48 = vpack.c.bf16 %v449_v47, %v448_v46  ;;  %v450_v49 = vld [vmem:[%s1044_s3 + $0x70] sm:$0xff]  ;;  %v451_v51 = vld [vmem:[%s1044_s3 + $0x78] sm:$0xff]  ;;  %v546_v54 = vld [vmem:[%s1043_s2] ss:$0 sm:$0xff]  ;;  %p878_p12 = pnand %p877_p11, %p871_p8 }
  0x3c   :  { %789 = vmatprep.subr.bf16.mxu0 %v788_v55  ;;  %679 = vmatmul.mubr.msk.f32.vlgmr.msra.gmra.mrb[2].mxu1 %vm147_vm1, %v41_v61  ;;  %v837_v52 = vpack.c.bf16 %v451_v51, %v450_v49  ;;  %v548_v9 = vld [vmem:[%s1045_s4] ss:$0 sm:$0xff] }
  0x3d   :  { %713 = vmatprep.mubr.msk.f32.mxu1 %vm900_vm0, %v901_v60  ;;  %817 = vmatpush3.bf16.msra.mxu1 %v816_v31 }
  0x3e   :  { %818 = vmatprep.subr.bf16.mxu1 %v899_v50 }
  0x3f   :  { %791 = vmatpush3.bf16.msra.mxu0 %v790_v62 }
  0x40   :  { %793 = vmatprep.subr.bf16.mxu0 %v792_v63 }
  0x41   :  { %820 = vmatpush3.bf16.msra.mxu1 %v819_v33 }
  0x42   :  { %821 = vmatprep.subr.bf16.mxu1 %v899_v50 }
  0x43   :  { %795 = vmatpush3.bf16.msra.mxu0 %v794_v4 }
  0x44   :  { %797 = vmatprep.subr.bf16.mxu0 %v796_v5 }
  0x45   :  { %823 = vmatpush3.bf16.msra.mxu1 %v822_v36 }
  0x46   :  { %824 = vmatprep.subr.bf16.mxu1 %v899_v50 }
  0x47   :  { %799 = vmatpush3.bf16.msra.mxu0 %v798_v10 }
  0x48   :  { %801 = vmatprep.subr.bf16.mxu0 %v800_v11 }
  0x49   :  { %826 = vmatpush3.bf16.msra.mxu1 %v825_v39 }
  0x4a   :  { %827 = vmatprep.subr.bf16.mxu1 %v899_v50 }
  0x4b   :  { %803 = vmatpush3.bf16.msra.mxu0 %v802_v16 }
  0x4c   :  { %805 = vmatprep.subr.bf16.mxu0 %v804_v17 }
  0x4d   :  { %829 = vmatpush3.bf16.msra.mxu1 %v828_v42 }
  0x4e   :  { %830 = vmatprep.subr.bf16.mxu1 %v899_v50 }
  0x4f   :  { %807 = vmatpush3.bf16.msra.mxu0 %v806_v22 }
  0x50   :  { %809 = vmatprep.subr.bf16.mxu0 %v808_v23 }
  0x51   :  { %832 = vmatpush3.bf16.msra.mxu1 %v831_v45 }
  0x52   :  { %833 = vmatprep.subr.bf16.mxu1 %v899_v50 }
  0x53   :  { %811 = vmatpush3.bf16.msra.mxu0 %v810_v26 }
  0x55   :  { %835 = vmatpush3.bf16.msra.mxu1 %v834_v48 }
  0x56   :  { %356 = vmatmul.mubr.f32.vlgmr.msra.gmra.mrb[2].mxu0 %v39_v27  ;;  %836 = vmatprep.subr.bf16.mxu1 %v899_v50 }
  0x59   :  { %838 = vmatpush3.bf16.msra.mxu1 %v837_v52 }
 0x109   :  { %v581_v53 = vpop.f32.mrb[0].mxu0 }
 0x10a   :  { %v582_v55 = vpop.f32.mrb[1].mxu0 }
 0x10b   :  { %v616_v56 = vpop.f32.mrb[0].mxu1  ;;  %v583_v57 = vadd.f32 %v582_v55, %v581_v53 }
 0x10c   :  { %v617_v58 = vpop.f32.mrb[1].mxu1 }
 0x10d   :  { %v618_v50 = vadd.f32 %v617_v58, %v616_v56  ;;  %v218_v59 = vadd.f32 %v583_v57, %v546_v54 }
 0x10f   :  { %v288_v60 = vadd.f32 %v618_v50, %v218_v59  ;;  %v427_v61 = vpop.f32.mrb[2].mxu1 }
 0x110   :  { %v680_v62 = vpop.f32.mrb[3].mxu1 }
 0x129   :  { %v651_v63 = vpop.f32.mrb[2].mxu0 }
 0x12a   :  { %v652_v0 = vpop.f32.mrb[3].mxu0 }
 0x12b   :  { %v653_v1 = vadd.f32 %v652_v0, %v651_v63 }
 0x12d   :  { %v358_v2 = vadd.f32 %v653_v1, %v288_v60 }
 0x12f   :  { %v428_v3 = vadd.f32 %v427_v61, %v358_v2 }
 0x131   :  { %v432_v4 = vmul.f32 0.70710677, %v428_v3  ;;  %v431_v6 = vmul.f32 0.5, %v428_v3 }
 0x133   :  { %846 = verf.f32 %v432_v4 }
 0x13d   :  { %v847_v5 = vpop.eup %846 }
 0x13e   :  { %v434_v7 = vadd.f32 1.0, %v847_v5 }
 0x140   :  { %v435_v8 = vmul.f32 %v434_v7, %v431_v6 }
 0x142   :  { %714 = vmatmul.mubr.f32.vlgmr.msra.gmra.mrb[4].mxu1 %v435_v8 }
 0x215   :  { %v525_v10 = vpop.f32.mrb[4].mxu1 }
 0x216   :  { %v526_v11 = vadd.f32 %v548_v9, %v525_v10  ;;  %v715_v12 = vpop.f32.mrb[5].mxu1 }
 0x218   :  { %530 = vst.msk [vmem:[#allocation5] sm:$0xff] %vm529_vm2, %v526_v11 }
 0x219   :  { %881 = shalt.err (!%p878_p12)
}
 0x21a   :  { %s882_s6 = scalar_lea.hbm %s1046_s5, 128 }
 0x21b   :  { %p883_p13 = scmp.ne.s32.totalorder %s1046_s5, %s882_s6  ;;  %p886_p0 = scmp.lt.u32.totalorder %s882_s6, %s1046_s5 }
 0x21d   :  { %p888_p1 = pnand %p886_p0, %p883_p13 }
 0x21f   :  { %891 = shalt.err (!%p888_p1)
}
 0x220   :  { %540 = dma.vmem_to_hbm [thread:$0]  %s538_s0, 128, %s1046_s5, [#allocation4]  }
 0x221   :  { %894 = dma.done.wait [#allocation4], 128  }
 0x222   :  { %895 = vsyncadd [#allocation4], 4294967168 }
 0x223   :  { %544 = vsyncpa [#allocation3], 1 }
 0x224   :  { %545 = vsyncpa [#allocation4], 1 }

</bundles_post_ra>
